<compile_context>
chip_gen: v7x
topology: tpu7x:2x2x1
jax: 0.10.0
libtpu: 0.0.40
codegen_flags: <defaults>
</compile_context>

<pallas_src>
import jax
import jax.numpy as jnp
from jax.experimental import pallas as pl
from jax.experimental.pallas import tpu as pltpu

# ----------------------------- problem sizes ------------------------------
NUM_STATES = 16
NUM_ACTIONS = 8
HIDDEN = (32, 32)            # model_layers
BATCH = 16
LOG_STD_MIN = -10.0
LOG_STD_MAX = 2.0
INIT_W = 0.003
STD_SCALE = 1e-6
OUT_W = 128                  # lane-dense padded output width: mean(S) | rew(1) | pad

# ---------------- packed-parameter slab layout (8-row aligned) ------------
# Slab A (lane width = 32 = HIDDEN dims):
#   rows [ 0:24)  w1  (S+A, H0)
#   rows [24:56)  w2  (H0, H1)
#   rows [56:64)  b1  (1, H0) zero-padded to 8 rows
#   rows [64:72)  b2  (1, H1) zero-padded to 8 rows
# Slab B (lane width = 16 = NUM_STATES):
#   rows [ 0:32)  w3  (H1, S)
#   rows [32:40)  b3  (1, S)  zero-padded to 8 rows
W2_OFF = NUM_STATES + NUM_ACTIONS            # 24
B1_OFF = W2_OFF + HIDDEN[0]                  # 56
B2_OFF = B1_OFF + 8                          # 64
SLAB_A_ROWS = B2_OFF + 8                     # 72
B3_OFF = HIDDEN[1]                           # 32
SLAB_B_ROWS = B3_OFF + 8                     # 40


# ----------------------------- Pallas kernel ------------------------------
def _known_reward_kernel(s_ref, a_ref, slab_a_ref, slab_b_ref, out_ref):
    s = s_ref[...]                                   # (B, S)
    a = a_ref[...]                                   # (B, A)

    # Static, 8-sublane-aligned, full-lane-width slices of the packed slabs.
    w1_s = slab_a_ref[0:NUM_STATES, :]               # (S,  H0)
    w1_a = slab_a_ref[NUM_STATES:W2_OFF, :]          # (A,  H0)
    w2 = slab_a_ref[W2_OFF:W2_OFF + HIDDEN[0], :]    # (H0, H1)
    b1 = slab_a_ref[B1_OFF:B1_OFF + 1, :]            # (1,  H0)
    b2 = slab_a_ref[B2_OFF:B2_OFF + 1, :]            # (1,  H1)
    w3 = slab_b_ref[0:HIDDEN[1], :]                  # (H1, S)
    b3 = slab_b_ref[B3_OFF:B3_OFF + 1, :]            # (1,  S)

    # Fused concat: cat([s, a], 1) @ W1 == s @ W1[:S] + a @ W1[S:S+A]
    h = (jnp.dot(s, w1_s, preferred_element_type=jnp.float32)
         + jnp.dot(a, w1_a, preferred_element_type=jnp.float32)
         + b1)
    h = jnp.maximum(h, 0.0)
    h = jnp.maximum(
        jnp.dot(h, w2, preferred_element_type=jnp.float32) + b2, 0.0)

    # mean = mu(cat(s, a)) + s
    mean = jnp.dot(h, w3, preferred_element_type=jnp.float32) + b3 + s

    # TODO(synk): the original compute_reward calls an arbitrary Python
    # reward_fn per sample via numpy (no Pallas equivalent); the in-kernel
    # XLU reduction below implements the concrete quadratic reward_fn defined
    # in this script: r(s, a) = -(|s|^2 + 0.1 |a|^2).
    rew = -(jnp.sum(s * s, axis=1, keepdims=True)
            + 0.1 * jnp.sum(a * a, axis=1, keepdims=True))           # (B, 1)

    # Pack mean | rew into one lane-dense (B, 128) slab -> single unmasked store.
    pad = jnp.zeros((mean.shape[0], OUT_W - (NUM_STATES + 1)), jnp.float32)
    out_ref[...] = jnp.concatenate([mean, rew, pad], axis=1)


# ------------------------------- wrapper -----------------------------------
def pack_params(params):
    """One-time packing of (w1,b1,w2,b2,w3,b3) into two sublane-stacked slabs."""
    w1, b1, w2, b2, w3, b3, _log_std = params

    def pad_rows(x, rows):
        return jnp.pad(x, ((0, rows - x.shape[0]), (0, 0)))

    slab_a = jnp.concatenate(
        [w1, w2, pad_rows(b1, 8), pad_rows(b2, 8)], axis=0)          # (72, 32)
    slab_b = jnp.concatenate([w3, pad_rows(b3, 8)], axis=0)          # (40, 16)
    assert slab_a.shape == (SLAB_A_ROWS, HIDDEN[0])
    assert slab_b.shape == (SLAB_B_ROWS, NUM_STATES)
    return slab_a, slab_b


@jax.jit
def known_reward_forward(s, a, slab_a, slab_b, log_std):
    """Mirror of KnownRewardModel.forward (stoch=False).

    Returns (mean, std, rew, done).
    """
    B, S = s.shape
    A = a.shape[1]

    flops = 2 * B * ((S + A) * HIDDEN[0] + HIDDEN[0] * HIDDEN[1] + HIDDEN[1] * S)
    bytes_accessed = 4 * (s.size + a.size + slab_a.size + slab_b.size + B * OUT_W)

    packed = pl.pallas_call(
        _known_reward_kernel,
        out_shape=jax.ShapeDtypeStruct((B, OUT_W), jnp.float32),
        grid=(1,),
        in_specs=[
            pl.BlockSpec((B, S), lambda i: (0, 0)),            # s
            pl.BlockSpec((B, A), lambda i: (0, 0)),            # a
            pl.BlockSpec(slab_a.shape, lambda i: (0, 0)),      # packed w1|w2|b1|b2
            pl.BlockSpec(slab_b.shape, lambda i: (0, 0)),      # packed w3|b3
        ],
        out_specs=pl.BlockSpec((B, OUT_W), lambda i: (0, 0)),
        compiler_params=pltpu.CompilerParams(
            dimension_semantics=("arbitrary",)),
        cost_estimate=pl.CostEstimate(
            flops=flops, transcendentals=0, bytes_accessed=bytes_accessed),
    )(s, a, slab_a, slab_b)

    mean = packed[:, :S]
    rew = packed[:, S:S + 1]
    # std is batch-invariant: compute once in the wrapper, broadcast lazily.
    std = jnp.broadcast_to(
        jnp.exp(jnp.clip(log_std, LOG_STD_MIN, LOG_STD_MAX)), mean.shape)
    done = jnp.zeros((0,), dtype=jnp.float32)
    # TODO(synk): only the stoch=False path is implemented (no Normal sampling).
    return mean, std, rew, done


# ------------------------- deterministic params ----------------------------
def quadratic_reward_fn(s_np, a_np):
    """Concrete stand-in for the user-supplied reward_fn (per-sample)."""
    return -(float((s_np ** 2).sum()) + 0.1 * float((a_np ** 2).sum()))


def init_params(key):
    """Match PyTorch init: Linear layers U(-1/sqrt(fan_in), 1/sqrt(fan_in)),
    last layer U(-init_w, init_w), log_std = randn(1, S) * 1e-6."""
    in_dim = NUM_STATES + NUM_ACTIONS
    dims = [in_dim, HIDDEN[0], HIDDEN[1], NUM_STATES]
    keys = jax.random.split(key, 7)

    def lin(kw, kb, fan_in, fan_out, bound):
        w = jax.random.uniform(kw, (fan_in, fan_out), jnp.float32, -bound, bound)
        b = jax.random.uniform(kb, (1, fan_out), jnp.float32, -bound, bound)
        return w, b

    w1, b1 = lin(keys[0], keys[1], dims[0], dims[1], 1.0 / float(jnp.sqrt(dims[0])))
    w2, b2 = lin(keys[2], keys[3], dims[1], dims[2], 1.0 / float(jnp.sqrt(dims[1])))
    w3, b3 = lin(keys[4], keys[5], dims[2], dims[3], INIT_W)
    log_std = jax.random.normal(keys[6], (1, NUM_STATES), jnp.float32) * STD_SCALE
    return (w1, b1, w2, b2, w3, b3, log_std)


# -------------------------------- main --------------------------------------
if __name__ == "__main__":
    key = jax.random.PRNGKey(0)
    k_s, k_a, k_p = jax.random.split(key, 3)
    s = jax.random.normal(k_s, (BATCH, NUM_STATES), jnp.float32)
    a = jax.random.normal(k_a, (BATCH, NUM_ACTIONS), jnp.float32)
    params = init_params(k_p)
    slab_a, slab_b = pack_params(params)          # one-time prep
    log_std = params[6]

    mean, std, rew, done = known_reward_forward(s, a, slab_a, slab_b, log_std)
    jax.block_until_ready((mean, std, rew, done))

    # Reference check against plain jnp (same math as the PyTorch forward).
    w1, b1, w2, b2, w3, b3, _ = params
    x = jnp.concatenate([s, a], axis=1)
    h = jnp.maximum(x @ w1 + b1, 0.0)
    h = jnp.maximum(h @ w2 + b2, 0.0)
    mean_ref = h @ w3 + b3 + s
    std_ref = jnp.broadcast_to(
        jnp.exp(jnp.clip(log_std, LOG_STD_MIN, LOG_STD_MAX)), mean_ref.shape)
    rew_ref = -(jnp.sum(s * s, axis=1, keepdims=True)
                + 0.1 * jnp.sum(a * a, axis=1, keepdims=True))

    assert mean.shape == (BATCH, NUM_STATES)
    assert std.shape == (BATCH, NUM_STATES)
    assert rew.shape == (BATCH, 1)
    assert done.shape == (0,)
    assert jnp.allclose(mean, mean_ref, atol=1e-5)
    assert jnp.allclose(std, std_ref, atol=1e-6)
    assert jnp.allclose(rew, rew_ref, atol=1e-5)
    print("KERNEL_OK")
</pallas_src>

<mosaic_0001>
module attributes {stable_mosaic.version = 11 : i64} {
  func.func @_known_reward_kernel(%arg0: i32, %arg1: memref<16x16xf32, #tpu.memory_space<vmem>>, %arg2: memref<16x8xf32, #tpu.memory_space<vmem>>, %arg3: memref<72x32xf32, #tpu.memory_space<vmem>>, %arg4: memref<40x16xf32, #tpu.memory_space<vmem>>, %arg5: memref<16x128xf32, #tpu.memory_space<vmem>>) attributes {dimension_semantics = [#tpu.dimension_semantics<arbitrary>], iteration_bounds = array<i64: 1>, scalar_prefetch = 0 : i64, scratch_operands = 0 : i64, tpu.core_type = #tpu.core_type<tc>, window_params = [{pipeline_mode = #tpu.pipeline_mode<synchronous>, transform_indices = @transform_0, window_bounds = array<i64: 16, 16>}, {pipeline_mode = #tpu.pipeline_mode<synchronous>, transform_indices = @transform_1, window_bounds = array<i64: 16, 8>}, {pipeline_mode = #tpu.pipeline_mode<synchronous>, transform_indices = @transform_2, window_bounds = array<i64: 72, 32>}, {pipeline_mode = #tpu.pipeline_mode<synchronous>, transform_indices = @transform_3, window_bounds = array<i64: 40, 16>}, {pipeline_mode = #tpu.pipeline_mode<synchronous>, transform_indices = @transform_4, window_bounds = array<i64: 16, 128>}]} {
    %c0 = arith.constant 0 : index
    %c0_0 = arith.constant 0 : index
    %0 = vector.load %arg1[%c0, %c0_0] : memref<16x16xf32, #tpu.memory_space<vmem>>, vector<16x16xf32>
    %c0_1 = arith.constant 0 : index
    %c0_2 = arith.constant 0 : index
    %1 = vector.load %arg2[%c0_1, %c0_2] : memref<16x8xf32, #tpu.memory_space<vmem>>, vector<16x8xf32>
    %c0_3 = arith.constant 0 : index
    %c0_4 = arith.constant 0 : index
    %2 = vector.load %arg3[%c0_3, %c0_4] : memref<72x32xf32, #tpu.memory_space<vmem>>, vector<16x32xf32>
    %c16 = arith.constant 16 : index
    %c0_5 = arith.constant 0 : index
    %3 = vector.load %arg3[%c16, %c0_5] : memref<72x32xf32, #tpu.memory_space<vmem>>, vector<8x32xf32>
    %c24 = arith.constant 24 : index
    %c0_6 = arith.constant 0 : index
    %4 = vector.load %arg3[%c24, %c0_6] : memref<72x32xf32, #tpu.memory_space<vmem>>, vector<32x32xf32>
    %c56 = arith.constant 56 : index
    %c0_7 = arith.constant 0 : index
    %5 = vector.load %arg3[%c56, %c0_7] : memref<72x32xf32, #tpu.memory_space<vmem>>, vector<1x32xf32>
    %c64 = arith.constant 64 : index
    %c0_8 = arith.constant 0 : index
    %6 = vector.load %arg3[%c64, %c0_8] : memref<72x32xf32, #tpu.memory_space<vmem>>, vector<1x32xf32>
    %c0_9 = arith.constant 0 : index
    %c0_10 = arith.constant 0 : index
    %7 = vector.load %arg4[%c0_9, %c0_10] : memref<40x16xf32, #tpu.memory_space<vmem>>, vector<32x16xf32>
    %c32 = arith.constant 32 : index
    %c0_11 = arith.constant 0 : index
    %8 = vector.load %arg4[%c32, %c0_11] : memref<40x16xf32, #tpu.memory_space<vmem>>, vector<1x16xf32>
    %cst = arith.constant dense<0.000000e+00> : vector<16x32xf32>
    %9 = tpu.matmul %0, %2, %cst {dimension_numbers = #tpu.dot_dimension_numbers<[1], [0], [0], [1], [0, 0, 1, 1], [], []>} : vector<16x16xf32>, vector<16x32xf32>, vector<16x32xf32> -> vector<16x32xf32>
    %cst_12 = arith.constant dense<0.000000e+00> : vector<16x32xf32>
    %10 = tpu.matmul %1, %3, %cst_12 {dimension_numbers = #tpu.dot_dimension_numbers<[1], [0], [0], [1], [0, 0, 1, 1], [], []>} : vector<16x8xf32>, vector<8x32xf32>, vector<16x32xf32> -> vector<16x32xf32>
    %11 = arith.addf %9, %10 : vector<16x32xf32>
    %12 = vector.broadcast %5 : vector<1x32xf32> to vector<16x32xf32>
    %13 = arith.addf %11, %12 : vector<16x32xf32>
    %cst_13 = arith.constant 0.000000e+00 : f32
    %14 = vector.broadcast %cst_13 : f32 to vector<16x32xf32>
    %15 = arith.maximumf %13, %14 : vector<16x32xf32>
    %cst_14 = arith.constant dense<0.000000e+00> : vector<16x32xf32>
    %16 = tpu.matmul %15, %4, %cst_14 {dimension_numbers = #tpu.dot_dimension_numbers<[1], [0], [0], [1], [0, 0, 1, 1], [], []>} : vector<16x32xf32>, vector<32x32xf32>, vector<16x32xf32> -> vector<16x32xf32>
    %17 = vector.broadcast %6 : vector<1x32xf32> to vector<16x32xf32>
    %18 = arith.addf %16, %17 : vector<16x32xf32>
    %cst_15 = arith.constant 0.000000e+00 : f32
    %19 = vector.broadcast %cst_15 : f32 to vector<16x32xf32>
    %20 = arith.maximumf %18, %19 : vector<16x32xf32>
    %cst_16 = arith.constant dense<0.000000e+00> : vector<16x16xf32>
    %21 = tpu.matmul %20, %7, %cst_16 {dimension_numbers = #tpu.dot_dimension_numbers<[1], [0], [0], [1], [0, 0, 1, 1], [], []>} : vector<16x32xf32>, vector<32x16xf32>, vector<16x16xf32> -> vector<16x16xf32>
    %22 = vector.broadcast %8 : vector<1x16xf32> to vector<16x16xf32>
    %23 = arith.addf %21, %22 : vector<16x16xf32>
    %24 = arith.addf %23, %0 : vector<16x16xf32>
    %25 = arith.mulf %0, %0 : vector<16x16xf32>
    %cst_17 = arith.constant dense<0.000000e+00> : vector<16xf32>
    %26 = vector.multi_reduction <add>, %25, %cst_17 [1] : vector<16x16xf32> to vector<16xf32>
    %27 = vector.shape_cast %26 : vector<16xf32> to vector<16x1xf32>
    %28 = arith.mulf %1, %1 : vector<16x8xf32>
    %cst_18 = arith.constant dense<0.000000e+00> : vector<16xf32>
    %29 = vector.multi_reduction <add>, %28, %cst_18 [1] : vector<16x8xf32> to vector<16xf32>
    %30 = vector.shape_cast %29 : vector<16xf32> to vector<16x1xf32>
    %cst_19 = arith.constant 1.000000e-01 : f32
    %31 = vector.broadcast %cst_19 : f32 to vector<16x1xf32>
    %32 = arith.mulf %31, %30 : vector<16x1xf32>
    %33 = arith.addf %27, %32 : vector<16x1xf32>
    %cst_20 = arith.constant 0.000000e+00 : f32
    %34 = vector.broadcast %cst_20 : f32 to vector<16x1xf32>
    %35 = arith.subf %34, %33 : vector<16x1xf32>
    %cst_21 = arith.constant 0.000000e+00 : f32
    %36 = vector.broadcast %cst_21 : f32 to vector<16x111xf32>
    %37 = tpu.concatenate %24, %35, %36 in 1 : vector<16x16xf32>, vector<16x1xf32>, vector<16x111xf32> -> vector<16x128xf32>
    %c0_22 = arith.constant 0 : index
    %c0_23 = arith.constant 0 : index
    %38 = vector.load %arg5[%c0_22, %c0_23] : memref<16x128xf32, #tpu.memory_space<vmem>>, vector<16x128xf32>
    tpu.vector_store %arg5[%c0_22, %c0_23], %37 {strides = array<i32>} : memref<16x128xf32, #tpu.memory_space<vmem>>, vector<16x128xf32>,
    return
  }
  func.func @transform_0(%arg0: i32) -> (i32, i32) {
    %c0_i32 = arith.constant 0 : i32
    %c0_i32_0 = arith.constant 0 : i32
    %c0_i32_1 = arith.constant 0 : i32
    return %c0_i32, %c0_i32_0 : i32, i32
  }
  func.func @transform_1(%arg0: i32) -> (i32, i32) {
    %c0_i32 = arith.constant 0 : i32
    %c0_i32_0 = arith.constant 0 : i32
    %c0_i32_1 = arith.constant 0 : i32
    return %c0_i32, %c0_i32_0 : i32, i32
  }
  func.func @transform_2(%arg0: i32) -> (i32, i32) {
    %c0_i32 = arith.constant 0 : i32
    %c0_i32_0 = arith.constant 0 : i32
    %c0_i32_1 = arith.constant 0 : i32
    return %c0_i32, %c0_i32_0 : i32, i32
  }
  func.func @transform_3(%arg0: i32) -> (i32, i32) {
    %c0_i32 = arith.constant 0 : i32
    %c0_i32_0 = arith.constant 0 : i32
    %c0_i32_1 = arith.constant 0 : i32
    return %c0_i32, %c0_i32_0 : i32, i32
  }
  func.func @transform_4(%arg0: i32) -> (i32, i32) {
    %c0_i32 = arith.constant 0 : i32
    %c0_i32_0 = arith.constant 0 : i32
    %c0_i32_1 = arith.constant 0 : i32
    return %c0_i32, %c0_i32_0 : i32, i32
  }
}

</mosaic_0001>

<bundles_post_ra>
// kernel: known_reward_forward.1
= control target key start
LH: loop header
LB: loop body
LE: loop exit
PB: predicated region body
PF: predicated region fallthrough
CT: control target
= control target key end

     0   :  { %vm35_vm0 = vcmask 64512   ;;  %vm117_vm1 = vcmask 130048   ;;  %vm211_vm2 = vcmask 261120   ;;  %vm406_vm3 = vcmask 138240   ;;  %s612_s2 = inlined_call_operand.vmem [shape: f32[72,32], index: 2, kind: input, shape index: {}]   ;;  %s613_s1 = inlined_call_operand.vmem [shape: f32[16,8], index: 1, kind: input, shape index: {}]   ;;  %s614_s0 = inlined_call_operand.vmem [shape: f32[16,16], index: 0, kind: input, shape index: {}]   ;;  %s615_s3 = inlined_call_operand.vmem [shape: f32[40,16], index: 3, kind: input, shape index: {}]   ;;  %s616_s4 = inlined_call_operand.vmem [shape: f32[16,128], index: 4, kind: output, shape index: {}]  }
   0x1   :  { %v21_v0 = vld [vmem:[%s612_s2] sm:$0xff]  ;;  %v22_v1 = vld [vmem:[%s612_s2 + $0x8] sm:$0xff]  ;;  %v23_v2 = vld [vmem:[%s612_s2 + $0x10] sm:$0xff] }
   0x2   :  { %v479_v3 = vpack.c.bf16 %v22_v1, %v21_v0  ;;  %445 = vmatprep.subr.mxu1 %v23_v2  ;;  %v19_v4 = vld [vmem:[%s613_s1] sm:$0xff]  ;;  %v20_v5 = vld [vmem:[%s613_s1 + $0x8] sm:$0xff]  ;;  %v24_v8 = vld [vmem:[%s612_s2 + $0x18] sm:$0xff] }
   0x3   :  { %v544_v6 = vld [vmem:[%s614_s0] sm:$0xff]  ;;  %446 = vmatpush3.msra.mxu1 %v23_v2  ;;  %447 = vmatprep.mubr.msk.f32.mxu1 %vm35_vm0, %v19_v4  ;;  %v553_v7 = vld [vmem:[%s614_s0 + $0x8] sm:$0xff]  ;;  %v27_v12 = vld [vmem:[%s612_s2 + $0x30] sm:$0xff]  ;;  %v390_v31 = vmul.f32 %v19_v4, %v19_v4  ;;  %v391_v34 = vmul.f32 %v20_v5, %v20_v5 }
   0x4   :  { %480 = vmatprep.subr.bf16.mxu0 %v479_v3  ;;  %448 = vmatmul.mubr.msk.f32.vlgmr.msra.gmra.mrb[0].mxu1 %vm35_vm0, %v20_v5  ;;  %v25_v9 = vld [vmem:[%s612_s2 + $0x20] sm:$0xff]  ;;  %v26_v11 = vld [vmem:[%s612_s2 + $0x28] sm:$0xff]  ;;  %v419_v19 = vld [vmem:[%s612_s2 + $0x38] ss:$0 sm:$0xff]  ;;  %v382_v33 = vmul.f32 %v544_v6, %v544_v6  ;;  %v383_v35 = vmul.f32 %v553_v7, %v553_v7 }
   0x5   :  { %482 = vmatpush3.bf16.msra.mxu0 %v479_v3  ;;  %454 = vmatprep.mubr.msk.f32.mxu0 %vm117_vm1, %v544_v6  ;;  %v483_v10 = vpack.c.bf16 %v25_v9, %v24_v8  ;;  %v487_v13 = vpack.c.bf16 %v27_v12, %v26_v11  ;;  %v30_v14 = vld [vmem:[%s615_s3] sm:$0xff]  ;;  %v31_v15 = vld [vmem:[%s615_s3 + $0x8] sm:$0xff]  ;;  %v32_v28 = vld [vmem:[%s615_s3 + $0x10] sm:$0xff]  ;;  %v392_v32 = vsel %vm35_vm0, %v390_v31, 0.0  ;;  %v395_v37 = vsel %vm35_vm0, %v391_v34, 0.0 }
   0x6   :  { %v491_v16 = vpack.c.bf16 %v31_v15, %v30_v14  ;;  %v33_v29 = vld [vmem:[%s615_s3 + $0x18] sm:$0xff]  ;;  %393 = vadd.xlane.f32.xlu0 %v392_v32  ;;  %v384_v36 = vsel %vm117_vm1, %v382_v33, 0.0  ;;  %v387_v38 = vsel %vm117_vm1, %v383_v35, 0.0  ;;  %v420_v39 = vld [vmem:[%s612_s2 + $0x40] ss:$0 sm:$0xff] }
   0x7   :  { %484 = vmatprep.subr.bf16.mxu1 %v483_v10  ;;  %v495_v30 = vpack.c.bf16 %v33_v29, %v32_v28  ;;  %385 = vadd.xlane.f32.xlu1 %v384_v36  ;;  %v423_v53 = vld [vmem:[%s615_s3 + $0x20] ss:$0 sm:$0xff] }
   0x8   :  { %455 = vmatmul.mubr.msk.f32.vlgmr.msra.gmra.mrb[0].mxu0 %vm117_vm1, %v553_v7  ;;  %486 = vmatpush3.bf16.msra.mxu1 %v483_v10 }
   0x9   :  { %488 = vmatprep.subr.bf16.mxu1 %v487_v13  ;;  %492 = vmatprep.subr.bf16.mxu0 %v491_v16 }
   0xa   :  { %494 = vmatpush3.bf16.msra.mxu0 %v491_v16  ;;  %396 = vadd.xlane.f32.xlu0 %v395_v37 }
   0xb   :  { %496 = vmatprep.subr.bf16.mxu0 %v495_v30  ;;  %388 = vadd.xlane.f32.xlu1 %v387_v38 }
   0xc   :  { %490 = vmatpush3.bf16.msra.mxu1 %v487_v13 }
   0xe   :  { %498 = vmatpush3.bf16.msra.mxu0 %v495_v30 }
  0x93   :  { %v394_v46 = vpop.xlane.xlu0 %393 }
  0x94   :  { %v386_v47 = vpop.xlane.xlu1 %385  ;;  %v398_v51 = vmul.f32 0.1, %v394_v46 }
  0x96   :  { %v400_v54 = vadd.f32 %v398_v51, %v386_v47 }
  0x97   :  { %v397_v48 = vpop.xlane.xlu0 %396 }
  0x98   :  { %v399_v49 = vmul.f32 0.1, %v397_v48  ;;  %v389_v50 = vpop.xlane.xlu1 %388  ;;  %v402_v61 = vsub.f32 0.0, %v400_v54 }
  0x9a   :  { %v401_v52 = vadd.f32 %v399_v49, %v389_v50 }
  0x9c   :  { %v403_v56 = vsub.f32 0.0, %v401_v52 }
  0xd7   :  { %v449_v17 = vpop.f32.mrb[0].mxu1 }
  0xd8   :  { %v108_v18 = vpop.f32.mrb[1].mxu1 }
  0xdb   :  { %v456_v20 = vpop.f32.mrb[0].mxu0 }
  0xdc   :  { %v196_v21 = vadd.f32 %v456_v20, %v449_v17  ;;  %v190_v22 = vpop.f32.mrb[1].mxu0 }
  0xdd   :  { %v191_v23 = vadd.f32 %v190_v22, %v108_v18 }
  0xde   :  { %v204_v24 = vadd.f32 %v419_v19, %v196_v21 }
  0xdf   :  { %v203_v25 = vadd.f32 %v419_v19, %v191_v23 }
  0xe0   :  { %v206_v27 = vmax.f32 %v204_v24, 0.0 }
  0xe1   :  { %v205_v26 = vmax.f32 %v203_v25, 0.0 }
  0xe3   :  { %465 = vmatprep.mubr.msk.f32.mxu1 %vm211_vm2, %v205_v26 }
  0xe4   :  { %466 = vmatmul.mubr.msk.f32.vlgmr.msra.gmra.mrb[2].mxu1 %vm211_vm2, %v206_v27 }
 0x1b7   :  { %v467_v40 = vpop.f32.mrb[2].mxu1 }
 0x1b8   :  { %v290_v41 = vadd.f32 %v467_v40, %v420_v39  ;;  %v284_v42 = vpop.f32.mrb[3].mxu1 }
 0x1b9   :  { %v285_v43 = vadd.f32 %v420_v39, %v284_v42 }
 0x1ba   :  { %v294_v45 = vmax.f32 %v290_v41, 0.0 }
 0x1bb   :  { %v293_v44 = vmax.f32 %v285_v43, 0.0 }
 0x1bd   :  { %476 = vmatprep.mubr.msk.f32.mxu0 %vm211_vm2, %v293_v44 }
 0x1be   :  { %477 = vmatmul.mubr.msk.f32.vlgmr.msra.gmra.mrb[2].mxu0 %vm211_vm2, %v294_v45 }
 0x291   :  { %v478_v55 = vpop.f32.mrb[2].mxu0 }
 0x292   :  { %v377_v57 = vadd.f32 %v478_v55, %v423_v53  ;;  %v371_v58 = vpop.f32.mrb[3].mxu0 }
 0x293   :  { %v372_v59 = vadd.f32 %v423_v53, %v371_v58 }
 0x294   :  { %v381_v60 = vadd.f32 %v377_v57, %v553_v7 }
 0x295   :  { %v380_v62 = vadd.f32 %v372_v59, %v544_v6 }
 0x296   :  { %v405_v63 = vsel %vm117_vm1, %v381_v60, %v403_v56 }
 0x297   :  { %v408_v0 = vsel %vm406_vm3, %v405_v63, 0.0  ;;  %v404_v1 = vsel %vm117_vm1, %v380_v62, %v402_v61 }
 0x298   :  { %410 = vst [vmem:[%s616_s4 + $0x8] sm:$0xff] %v408_v0  ;;  %v407_v2 = vsel %vm406_vm3, %v404_v1, 0.0 }
 0x299   :  { %409 = vst [vmem:[%s616_s4] sm:$0xff] %v407_v2 }

</bundles_post_ra>
